<compile_context>
chip_gen: v5e
topology: v5e:2x2
jax: 0.10.0
libtpu: 0.0.40
codegen_flags: <defaults>
</compile_context>

<pallas_src>
import functools

import jax
import jax.numpy as jnp
from jax.experimental import pallas as pl
from jax.experimental.pallas import tpu as pltpu

GAMMA = 1.5
ALPHA = 0.25

_LANE = 128
_SUBLANE = 8
# 4096 x 128 f32 = 2 MiB per input block; 2 inputs double-buffered ~ 8 MiB.
_MAX_TILE_ROWS = 4096
# TODO(synk): on v7x, raise to 8192-16384 rows + vmem_limit_bytes once the chip
# generation is queried at trace time (pltpu.get_tpu_info()).


def _round_up(x, m):
    return ((x + m - 1) // m) * m


def _focal_loss_kernel(pred_ref, true_ref, out_ref, *, gamma, alpha,
                       tile_rows, num_shards, tiles_per_shard, num_tiles,
                       total_n, needs_mask):
    s = pl.program_id(0)   # "parallel" shard axis (megacore hint)
    i = pl.program_id(1)   # "arbitrary" reduction axis

    @pl.when(i == 0)
    def _():
        out_ref[...] = jnp.zeros_like(out_ref)

    x = pred_ref[...].astype(jnp.float32)
    y = true_ref[...].astype(jnp.float32)   # cast in-kernel: no wrapper HBM pass

    # One shared EUP exp feeds both the stable BCE and the sigmoid rebuild.
    e = jnp.exp(-jnp.abs(x))
    # BCEWithLogitsLoss(reduction='none'): max(x,0) - x*y + log1p(exp(-|x|))
    bce = jnp.maximum(x, 0.0) - x * y + jnp.log1p(e)
    # sigmoid(x): x >= 0 -> 1/(1+e) ; x < 0 -> e/(1+e).
    # EUP approx reciprocal + one Newton step (cheaper than precise f32 divide).
    d = 1.0 + e
    r = pl.reciprocal(d, approx=True)
    r = r * (2.0 - d * r)                     # Newton refinement, ~1e-7 rel err
    p = jnp.where(x >= 0.0, r, e * r)

    # Folded blends.
    b = p + y - 2.0 * p * y                       # == 1 - p_t
    af = (1.0 - alpha) + y * (2.0 * alpha - 1.0)  # == y*a + (1-y)*(1-a)
    if gamma == 1.5:
        mf = b * jnp.sqrt(b)                      # exact rewrite of b**1.5
    elif gamma == 2.0:
        mf = b * b
    elif gamma == 1.0:
        mf = b
    else:
        mf = jnp.power(b, gamma)
    loss = bce * af * mf

    def accumulate(v):
        # Resident (8,128) f32 slab (one vreg): pure VPU adds per grid step.
        out_ref[...] += v.reshape(tile_rows // _SUBLANE, _SUBLANE, _LANE).sum(axis=0)

    if needs_mask:
        # Only the last tile can hold invalid elements (sub-128 zero pad and/or
        # the block over-hang past the array) -> mask there and nowhere else.
        is_last = jnp.logical_and(s == num_shards - 1, i == tiles_per_shard - 1)

        @pl.when(jnp.logical_not(is_last))
        def _():
            accumulate(loss)

        @pl.when(is_last)
        def _():
            base_row = (num_tiles - 1) * tile_rows
            row_ids = jax.lax.broadcasted_iota(jnp.int32, (tile_rows, _LANE), 0)
            lane_ids = jax.lax.broadcasted_iota(jnp.int32, (tile_rows, _LANE), 1)
            flat_idx = (base_row + row_ids) * _LANE + lane_ids
            # select (not multiply): correct even if over-hang rows are NaN/Inf
            accumulate(jnp.where(flat_idx < total_n, loss, 0.0))
    else:
        accumulate(loss)


def focal_loss(pred, true, gamma=GAMMA, alpha=ALPHA):
    """Focal loss, mean reduction (== FocalLoss(nn.BCEWithLogitsLoss()))."""
    assert pred.shape == true.shape
    n = int(pred.size)
    assert n > 0

    # Flatten only (bitcast-level reshapes); no wrapper dtype casts.
    pred_flat = pred.reshape(-1)
    true_flat = true.reshape(-1)

    rem = (-n) % _LANE            # pad at most 127 elements (usually 0)
    if rem:
        pred_flat = jnp.pad(pred_flat, (0, rem))
        true_flat = jnp.pad(true_flat, (0, rem))
    rows = (n + rem) // _LANE
    pred2d = pred_flat.reshape(rows, _LANE)
    true2d = true_flat.reshape(rows, _LANE)

    tile_rows = min(_MAX_TILE_ROWS, _round_up(rows, _SUBLANE))
    num_tiles = pl.cdiv(rows, tile_rows)
    # Two shards only when the split is exact, so the grid never addresses an
    # out-of-range block.  Helps v7x's 2 TCs; harmless on v5e/v6e.
    num_shards = 2 if (num_tiles >= 2 and num_tiles % 2 == 0) else 1
    tiles_per_shard = num_tiles // num_shards
    covered = num_tiles * tile_rows * _LANE
    needs_mask = covered != n

    kernel = functools.partial(
        _focal_loss_kernel, gamma=gamma, alpha=alpha, tile_rows=tile_rows,
        num_shards=num_shards, tiles_per_shard=tiles_per_shard,
        num_tiles=num_tiles, total_n=n, needs_mask=needs_mask)

    bytes_accessed = (pred2d.size * pred2d.dtype.itemsize
                      + true2d.size * true2d.dtype.itemsize
                      + num_shards * _SUBLANE * _LANE * 4)
    cost = pl.CostEstimate(
        flops=16 * covered,
        transcendentals=4 * covered,    # exp, log1p, reciprocal, sqrt
        bytes_accessed=bytes_accessed)

    partials = pl.pallas_call(
        kernel,
        out_shape=jax.ShapeDtypeStruct((num_shards * _SUBLANE, _LANE), jnp.float32),
        grid_spec=pltpu.PrefetchScalarGridSpec(
            num_scalar_prefetch=0,
            grid=(num_shards, tiles_per_shard),
            in_specs=[
                pl.BlockSpec((tile_rows, _LANE),
                             lambda s, i: (s * tiles_per_shard + i, 0)),
                pl.BlockSpec((tile_rows, _LANE),
                             lambda s, i: (s * tiles_per_shard + i, 0)),
            ],
            out_specs=pl.BlockSpec((_SUBLANE, _LANE), lambda s, i: (s, 0)),
        ),
        compiler_params=pltpu.CompilerParams(
            dimension_semantics=("parallel", "arbitrary")),
        cost_estimate=cost,
    )(pred2d, true2d)

    # Final cross-lane/sublane collapse + 'mean' normalization once, in XLA.
    return jnp.sum(partials) / n


def _focal_loss_ref(pred, true, gamma=GAMMA, alpha=ALPHA):
    x = pred.astype(jnp.float32)
    y = true.astype(jnp.float32)
    bce = jnp.maximum(x, 0.0) - x * y + jnp.log1p(jnp.exp(-jnp.abs(x)))
    p = jax.nn.sigmoid(x)
    p_t = y * p + (1.0 - y) * (1.0 - p)
    af = y * alpha + (1.0 - y) * (1.0 - alpha)
    mf = jnp.power(1.0 - p_t, gamma)
    return jnp.mean(bce * af * mf)


if __name__ == "__main__":
    key = jax.random.PRNGKey(0)
    k1, k2 = jax.random.split(key)

    # NCHW input, small shapes: B=2, C=4, H=W=16  (lane-aligned: no mask path)
    pred = jax.random.normal(k1, (2, 4, 16, 16), dtype=jnp.float32) * 2.0
    true = (jax.random.uniform(k2, (2, 4, 16, 16)) > 0.7).astype(jnp.float32)
    out = jax.block_until_ready(focal_loss(pred, true))
    ref = _focal_loss_ref(pred, true)
    assert jnp.allclose(out, ref, rtol=2e-5, atol=1e-6), (out, ref)

    # Non-128-multiple size: exercises the sub-128 pad + last-tile mask path.
    k3, k4 = jax.random.split(k1)
    pred2 = jax.random.normal(k3, (3, 5, 7, 9), dtype=jnp.float32)
    true2 = (jax.random.uniform(k4, (3, 5, 7, 9)) > 0.5).astype(jnp.float32)
    out2 = jax.block_until_ready(focal_loss(pred2, true2))
    ref2 = _focal_loss_ref(pred2, true2)
    assert jnp.allclose(out2, ref2, rtol=2e-5, atol=1e-6), (out2, ref2)

    print("KERNEL_OK")
</pallas_src>

<mosaic_0001>
module attributes {stable_mosaic.version = 11 : i64} {
  func.func @_focal_loss_kernel(%arg0: i32, %arg1: i32, %arg2: memref<16x128xf32, #tpu.memory_space<vmem>>, %arg3: memref<16x128xf32, #tpu.memory_space<vmem>>, %arg4: memref<8x128xf32, #tpu.memory_space<vmem>>) attributes {dimension_semantics = [#tpu.dimension_semantics<parallel>, #tpu.dimension_semantics<arbitrary>], iteration_bounds = array<i64: 1, 1>, scalar_prefetch = 0 : i64, scratch_operands = 0 : i64, tpu.core_type = #tpu.core_type<tc>, window_params = [{transform_indices = @transform_0, window_bounds = array<i64: 16, 128>}, {transform_indices = @transform_1, window_bounds = array<i64: 16, 128>}, {transform_indices = @transform_2, window_bounds = array<i64: 8, 128>}]} {
    %c0_i32 = arith.constant 0 : i32
    %0 = arith.cmpi eq, %arg1, %c0_i32 : i32
    %1 = arith.extui %0 : i1 to i32
    %c0_i32_0 = arith.constant 0 : i32
    %2 = arith.cmpi ne, %1, %c0_i32_0 : i32
    scf.if %2 {
      %cst_16 = arith.constant 0.000000e+00 : f32
      %44 = vector.broadcast %cst_16 : f32 to vector<8x128xf32>
      %c0_17 = arith.constant 0 : index
      %c0_18 = arith.constant 0 : index
      %45 = vector.load %arg4[%c0_17, %c0_18] : memref<8x128xf32, #tpu.memory_space<vmem>>, vector<8x128xf32>
      tpu.vector_store %arg4[%c0_17, %c0_18], %44 {strides = array<i32>} : memref<8x128xf32, #tpu.memory_space<vmem>>, vector<8x128xf32>,
    } else {
    }
    %c0 = arith.constant 0 : index
    %c0_1 = arith.constant 0 : index
    %3 = vector.load %arg2[%c0, %c0_1] : memref<16x128xf32, #tpu.memory_space<vmem>>, vector<16x128xf32>
    %c0_2 = arith.constant 0 : index
    %c0_3 = arith.constant 0 : index
    %4 = vector.load %arg3[%c0_2, %c0_3] : memref<16x128xf32, #tpu.memory_space<vmem>>, vector<16x128xf32>
    %5 = math.absf %3 : vector<16x128xf32>
    %cst = arith.constant 0.000000e+00 : f32
    %6 = vector.broadcast %cst : f32 to vector<16x128xf32>
    %7 = arith.subf %6, %5 : vector<16x128xf32>
    %8 = math.exp %7 : vector<16x128xf32>
    %cst_4 = arith.constant 0.000000e+00 : f32
    %9 = vector.broadcast %cst_4 : f32 to vector<16x128xf32>
    %10 = arith.maximumf %3, %9 : vector<16x128xf32>
    %11 = arith.mulf %3, %4 : vector<16x128xf32>
    %12 = arith.subf %10, %11 : vector<16x128xf32>
    %13 = math.log1p %8 : vector<16x128xf32>
    %14 = arith.addf %12, %13 : vector<16x128xf32>
    %cst_5 = arith.constant 1.000000e+00 : f32
    %15 = vector.broadcast %cst_5 : f32 to vector<16x128xf32>
    %16 = arith.addf %15, %8 : vector<16x128xf32>
    %17 = tpu.reciprocal %16 {approx = true} : vector<16x128xf32> -> vector<16x128xf32>
    %18 = arith.mulf %16, %17 : vector<16x128xf32>
    %cst_6 = arith.constant 2.000000e+00 : f32
    %19 = vector.broadcast %cst_6 : f32 to vector<16x128xf32>
    %20 = arith.subf %19, %18 : vector<16x128xf32>
    %21 = arith.mulf %17, %20 : vector<16x128xf32>
    %cst_7 = arith.constant 0.000000e+00 : f32
    %22 = vector.broadcast %cst_7 : f32 to vector<16x128xf32>
    %23 = arith.cmpf oge, %3, %22 : vector<16x128xf32>
    %24 = arith.mulf %8, %21 : vector<16x128xf32>
    %25 = arith.select %23, %21, %24 : vector<16x128xi1>, vector<16x128xf32>
    %26 = arith.addf %25, %4 : vector<16x128xf32>
    %cst_8 = arith.constant 2.000000e+00 : f32
    %27 = vector.broadcast %cst_8 : f32 to vector<16x128xf32>
    %28 = arith.mulf %27, %25 : vector<16x128xf32>
    %29 = arith.mulf %28, %4 : vector<16x128xf32>
    %30 = arith.subf %26, %29 : vector<16x128xf32>
    %cst_9 = arith.constant -5.000000e-01 : f32
    %31 = vector.broadcast %cst_9 : f32 to vector<16x128xf32>
    %32 = arith.mulf %4, %31 : vector<16x128xf32>
    %cst_10 = arith.constant 7.500000e-01 : f32
    %33 = vector.broadcast %cst_10 : f32 to vector<16x128xf32>
    %34 = arith.addf %33, %32 : vector<16x128xf32>
    %35 = math.sqrt %30 : vector<16x128xf32>
    %36 = arith.mulf %30, %35 : vector<16x128xf32>
    %37 = arith.mulf %14, %34 : vector<16x128xf32>
    %38 = arith.mulf %37, %36 : vector<16x128xf32>
    %c0_11 = arith.constant 0 : index
    %c0_12 = arith.constant 0 : index
    %39 = vector.load %arg4[%c0_11, %c0_12] : memref<8x128xf32, #tpu.memory_space<vmem>>, vector<8x128xf32>
    %40 = vector.shape_cast %38 : vector<16x128xf32> to vector<2x8x128xf32>
    %cst_13 = arith.constant dense<0.000000e+00> : vector<8x128xf32>
    %41 = vector.multi_reduction <add>, %40, %cst_13 [0] : vector<2x8x128xf32> to vector<8x128xf32>
    %42 = arith.addf %39, %41 : vector<8x128xf32>
    %c0_14 = arith.constant 0 : index
    %c0_15 = arith.constant 0 : index
    %43 = vector.load %arg4[%c0_14, %c0_15] : memref<8x128xf32, #tpu.memory_space<vmem>>, vector<8x128xf32>
    tpu.vector_store %arg4[%c0_14, %c0_15], %42 {strides = array<i32>} : memref<8x128xf32, #tpu.memory_space<vmem>>, vector<8x128xf32>,
    return
  }
  func.func @transform_0(%arg0: i32, %arg1: i32) -> (i32, i32) {
    %c1_i32 = arith.constant 1 : i32
    %0 = arith.muli %arg0, %c1_i32 : i32
    %1 = arith.addi %0, %arg1 : i32
    %c0_i32 = arith.constant 0 : i32
    %c0_i32_0 = arith.constant 0 : i32
    return %1, %c0_i32 : i32, i32
  }
  func.func @transform_1(%arg0: i32, %arg1: i32) -> (i32, i32) {
    %c1_i32 = arith.constant 1 : i32
    %0 = arith.muli %arg0, %c1_i32 : i32
    %1 = arith.addi %0, %arg1 : i32
    %c0_i32 = arith.constant 0 : i32
    %c0_i32_0 = arith.constant 0 : i32
    return %1, %c0_i32 : i32, i32
  }
  func.func @transform_2(%arg0: i32, %arg1: i32) -> (i32, i32) {
    %c0_i32 = arith.constant 0 : i32
    %c0_i32_0 = arith.constant 0 : i32
    return %arg0, %c0_i32 : i32, i32
  }
}

</mosaic_0001>

<bundles_post_ra>
// kernel: tpu_custom_call.1
= control target key start
LH: loop header
LB: loop body
LE: loop exit
PB: predicated region body
PF: predicated region fallthrough
CT: control target
= control target key end

     0   :  { %7 = vsyncpa [#allocation3], 0  ;;  %s332_s0 = inlined_call_operand.hbm [shape: f32[16,128], index: 0, kind: input, shape index: {}]   ;;  %s333_s1 = inlined_call_operand.hbm [shape: f32[16,128], index: 1, kind: input, shape index: {}]   ;;  %s334_s2 = inlined_call_operand.hbm [shape: f32[8,128], index: 2, kind: output, shape index: {}]  }
   0x1   :  { %8 = vsyncpa [#allocation6], 0 }
   0x2   :  { %9 = vsyncpa [#allocation4], 0  ;;  %s18_s11 = sshll.u32 %s332_s0, 4  ;;  %s279_s12 = smov [#allocation2]   ;;  %s19_s11 = int_to_ptr.hbm [resolvable:$true] %s18_s11 }
   0x3   :  { %s20_s13 = sshll.u32 %s279_s12, 4  ;;  %s35_s16 = sshll.u32 %s333_s1, 4  ;;  %s21_s13 = int_to_ptr.vmem [resolvable:$true] %s20_s13  ;;  %s36_s16 = int_to_ptr.hbm [resolvable:$true] %s35_s16 }
   0x4   :  { %s280_s17 = smov 128   ;;  %s281_s18 = smov 8  }
   0x5   :  { %26 = dma.hbm_to_vmem [thread:$0]  %s19_s11, 256, %s21_s13, [#allocation3], %s280_s17, %s280_s17, %s281_s18  }
   0x6   :  { %s282_s19 = smov [#allocation5]  }
   0x7   :  { %s37_s20 = sshll.u32 %s282_s19, 4  ;;  %s38_s20 = int_to_ptr.vmem [resolvable:$true] %s37_s20 }
   0x8   :  { %43 = dma.hbm_to_vmem [thread:$0]  %s36_s16, 256, %s38_s20, [#allocation6], %s280_s17, %s280_s17, %s281_s18  }
   0x9   :  { %273 = dma.done.wait [#allocation3], 256  }
   0xa   :  { %274 = vsyncadd [#allocation3], 4294967040 }
   0xb   :  { %275 = dma.done.wait [#allocation6], 256  }
   0xc   :  { %276 = vsyncadd [#allocation6], 4294967040  ;;  %v305_v0 = vld [vmem:[#allocation2] sm:$0xff]  ;;  %v307_v1 = vld [vmem:[#allocation2 + $0x8] sm:$0xff]  ;;  %s283_s0 = smov [#allocation7]   ;;  %s168_s23 = sshll.u32 %s334_s2, 4  ;;  %s169_s23 = int_to_ptr.hbm [resolvable:$true] %s168_s23 }
   0xd   :  { %v65_v2 = vand.u32 2147483647, %v305_v0  ;;  %v66_v3 = vand.u32 2147483647, %v307_v1  ;;  %vm109_vm0 = vcmp.ge.f32.partialorder %v305_v0, 0.0  ;;  %v63_v20 = vld [vmem:[#allocation5] sm:$0xff] }
   0xe   :  { %vm110_vm1 = vcmp.ge.f32.partialorder %v307_v1, 0.0  ;;  %v64_v22 = vld [vmem:[#allocation5 + $0x8] sm:$0xff]  ;;  %v73_v44 = vmax.f32 %v305_v0, 0.0  ;;  %v74_v45 = vmax.f32 %v307_v1, 0.0  ;;  %v75_v46 = vmul.f32 %v63_v20, %v305_v0  ;;  %s166_s1 = sshll.u32 %s283_s0, 4  ;;  %s167_s1 = int_to_ptr.vmem [resolvable:$true] %s166_s1 }
   0xf   :  { %v67_v4 = vsub.f32 0.0, %v65_v2  ;;  %v68_v5 = vsub.f32 0.0, %v66_v3  ;;  %v76_v48 = vmul.f32 %v64_v22, %v307_v1  ;;  %v123_v59 = vmul.f32 -0.5, %v63_v20 }
  0x10   :  { %v77_v58 = vsub.f32 %v73_v44, %v75_v46  ;;  %v124_v60 = vmul.f32 -0.5, %v64_v22 }
  0x11   :  { %v69_v6 = vmul.f32 1.442695, %v67_v4  ;;  %v71_v7 = vmul.f32 1.442695, %v68_v5  ;;  %v78_v62 = vsub.f32 %v74_v45, %v76_v48  ;;  %v125_v5 = vadd.f32 0.75, %v123_v59 }
  0x13   :  { %185 = vpow2.f32 %v69_v6  ;;  %v126_v6 = vadd.f32 0.75, %v124_v60 }
  0x14   :  { %187 = vpow2.f32 %v71_v7 }
  0x19   :  { %v186_v8 = vpop.eup %185 }
  0x1a   :  { %v188_v9 = vpop.eup %187  ;;  %v79_v10 = vadd.f32 1.0, %v186_v8  ;;  %v82_v34 = vmul.f32 -0.5, %v186_v8  ;;  %v85_v39 = vand.u32 2147483647, %v186_v8 }
  0x1b   :  { %v88_v11 = vadd.f32 1.0, %v188_v9  ;;  %v91_v35 = vmul.f32 -0.5, %v188_v9  ;;  %v94_v42 = vand.u32 2147483647, %v188_v9 }
  0x1c   :  { %189 = vrcp.f32 %v79_v10  ;;  %v83_v37 = vadd.f32 1.0, %v82_v34  ;;  %vm317_vm2 = vcmp.lt.f32.partialorder %v85_v39, 0.0004427343 }
  0x1d   :  { %191 = vrcp.f32 %v88_v11  ;;  %v92_v40 = vadd.f32 1.0, %v91_v35  ;;  %vm321_vm3 = vcmp.lt.f32.partialorder %v94_v42, 0.0004427343 }
  0x1e   :  { %193 = vlog2.f32 %v79_v10  ;;  %v84_v50 = vmul.f32 %v186_v8, %v83_v37 }
  0x1f   :  { %195 = vlog2.f32 %v88_v11  ;;  %v93_v54 = vmul.f32 %v188_v9, %v92_v40 }
  0x22   :  { %v190_v12 = vpop.eup %189 }
  0x23   :  { %v192_v13 = vpop.eup %191  ;;  %v103_v14 = vmul.f32 %v190_v12, %v79_v10 }
  0x24   :  { %v104_v15 = vmul.f32 %v192_v13, %v88_v11  ;;  %v194_v36 = vpop.eup %193 }
  0x25   :  { %v105_v16 = vsub.f32 2.0, %v103_v14  ;;  %v196_v38 = vpop.eup %195  ;;  %v81_v49 = vmul.f32 0.6931472, %v194_v36 }
  0x26   :  { %v106_v17 = vsub.f32 2.0, %v104_v15  ;;  %v90_v53 = vmul.f32 0.6931472, %v196_v38 }
  0x27   :  { %v107_v18 = vmul.f32 %v190_v12, %v105_v16  ;;  %v87_v63 = vsel %vm317_vm2, %v84_v50, %v81_v49 }
  0x28   :  { %v108_v19 = vmul.f32 %v192_v13, %v106_v17  ;;  %v96_v1 = vsel %vm321_vm3, %v93_v54, %v90_v53  ;;  %v97_v4 = vadd.f32 %v87_v63, %v77_v58 }
  0x29   :  { %v111_v21 = vmul.f32 %v186_v8, %v107_v18  ;;  %v98_v8 = vadd.f32 %v96_v1, %v78_v62 }
  0x2a   :  { %v112_v23 = vmul.f32 %v188_v9, %v108_v19  ;;  %v153_v15 = vmul.f32 %v125_v5, %v97_v4 }
  0x2b   :  { %v113_v24 = vsel %vm109_vm0, %v107_v18, %v111_v21  ;;  %v154_v18 = vmul.f32 %v126_v6, %v98_v8 }
  0x2c   :  { %v114_v25 = vsel %vm110_vm1, %v108_v19, %v112_v23  ;;  %v115_v26 = vadd.f32 %v113_v24, %v63_v20  ;;  %v117_v27 = vmul.f32 2.0, %v113_v24 }
  0x2d   :  { %v116_v28 = vadd.f32 %v114_v25, %v64_v22  ;;  %v118_v29 = vmul.f32 2.0, %v114_v25 }
  0x2e   :  { %v119_v30 = vmul.f32 %v117_v27, %v63_v20 }
  0x2f   :  { %v120_v31 = vmul.f32 %v118_v29, %v64_v22 }
  0x30   :  { %v121_v32 = vsub.f32 %v115_v26, %v119_v30 }
  0x31   :  { %v122_v33 = vsub.f32 %v116_v28, %v120_v31 }
  0x32   :  { %197 = vrsqrt.f32 %v121_v32  ;;  %vm134_vm4 = vcmp.eq.f32.partialorder %v121_v32, inf  ;;  %v137_v9 = vand.u32 2147483648, %v121_v32  ;;  %vm136_vm5 = vcmp.eq.f32.partialorder %v121_v32, 0.0 }
  0x33   :  { %199 = vrsqrt.f32 %v122_v33  ;;  %vm146_vm6 = vcmp.eq.f32.partialorder %v122_v33, inf  ;;  %v149_v12 = vand.u32 2147483648, %v122_v33  ;;  %vm148_vm7 = vcmp.eq.f32.partialorder %v122_v33, 0.0 }
  0x38   :  { %v198_v41 = vpop.eup %197 }
  0x39   :  { %v200_v43 = vpop.eup %199  ;;  %v128_v47 = vmul.f32 %v198_v41, %v121_v32 }
  0x3a   :  { %v140_v51 = vmul.f32 %v200_v43, %v122_v33 }
  0x3b   :  { %v129_v55 = vmul.f32 %v198_v41, %v128_v47 }
  0x3c   :  { %v141_v57 = vmul.f32 %v200_v43, %v140_v51 }
  0x3d   :  { %v130_v61 = vmul.f32 0.5, %v129_v55 }
  0x3e   :  { %v142_v0 = vmul.f32 0.5, %v141_v57 }
  0x3f   :  { %v131_v2 = vsub.f32 1.5, %v130_v61 }
  0x40   :  { %v143_v3 = vsub.f32 1.5, %v142_v0 }
  0x41   :  { %v132_v7 = vmul.f32 %v198_v41, %v131_v2 }
  0x42   :  { %v144_v10 = vmul.f32 %v200_v43, %v143_v3 }
  0x43   :  { %v133_v11 = vmul.f32 %v132_v7, %v121_v32 }
  0x44   :  { %v145_v13 = vmul.f32 %v144_v10, %v122_v33 }
  0x45   :  { %v135_v14 = vsel %vm134_vm4, %v121_v32, %v133_v11 }
  0x46   :  { %v138_v16 = vsel %vm136_vm5, %v137_v9, %v135_v14  ;;  %v147_v17 = vsel %vm146_vm6, %v122_v33, %v145_v13 }
  0x47   :  { %v150_v19 = vsel %vm148_vm7, %v149_v12, %v147_v17  ;;  %v151_v20 = vmul.f32 %v138_v16, %v121_v32 }
  0x48   :  { %v152_v21 = vmul.f32 %v150_v19, %v122_v33 }
  0x49   :  { %v155_v22 = vmul.f32 %v153_v15, %v151_v20 }
  0x4a   :  { %v156_v23 = vmul.f32 %v154_v18, %v152_v21 }
  0x4c   :  { %v158_v24 = vadd.f32 %v156_v23, %v155_v22 }
  0x4e   :  { %160 = vst [vmem:[#allocation7] sm:$0xff] %v158_v24 }
  0x4f   :  { %171 = dma.vmem_to_hbm [thread:$0]  %s167_s1, 128, %s169_s23, [#allocation4]  }
  0x50   :  { %277 = dma.done.wait [#allocation4], 128  }
  0x51   :  { %278 = vsyncadd [#allocation4], 4294967168 }
  0x52   :  { %176 = vsyncpa [#allocation3], 1 }
  0x53   :  { %177 = vsyncpa [#allocation6], 1 }
  0x54   :  { %178 = vsyncpa [#allocation4], 1 }

</bundles_post_ra>
